<compile_context>
chip_gen: v5e
topology: v5e:2x2
jax: 0.10.0
libtpu: 0.0.40
codegen_flags: <defaults>
</compile_context>

<pallas_src>
import functools
import math

import jax
import jax.numpy as jnp
import numpy as np
from jax.experimental import pallas as pl
from jax.experimental.pallas import tpu as pltpu


def _round_up(x, m):
    return ((x + m - 1) // m) * m


def _cdiv(a, b):
    return (a + b - 1) // b


def _rope_half_kernel(fold, offset_ref, tab_ref, cos_ref, sin_ref):
    # offset_ref : SMEM int32[1]  scalar-prefetch sequence offset
    # tab_ref    : f32[2, W]      row 0 = inv_freq tiled over `fold` position
    #                             groups, row 1 = (group index) * inv_freq
    # cos_ref/sin_ref : (tile_rows, W) half-width output slabs.  Global slab
    #   row R holds positions offset + R*fold + g, g = lane // (dim//2).
    i = pl.program_id(0)
    rows = cos_ref.shape[0]

    base = (offset_ref[0] + i * rows * fold).astype(jnp.float32)
    row_ids = jax.lax.broadcasted_iota(jnp.int32, (rows, 1), 0).astype(jnp.float32)
    row_pos = base + row_ids * float(fold)                      # (rows, 1)

    tab = tab_ref[...]                                          # (2, W) f32
    inv = tab[0:1, :]                                           # (1, W)
    phase = tab[1:2, :]                                         # (1, W)

    # All angle math in f32; cast only on the final store.
    ang = row_pos * inv + phase                                 # (rows, W)
    cos_ref[...] = jnp.cos(ang).astype(cos_ref.dtype)
    sin_ref[...] = jnp.sin(ang).astype(sin_ref.dtype)


def rotary_embedding_forward(max_seq_len, dim, base=10000, offset=0,
                             ntk_alpha=1.0, out_dtype=jnp.float32):
    """Returns [cos, sin], each of shape (1, max_seq_len, 1, dim).

    Matches RotaryEmbedding.forward(max_seq_len, offset, ntk_alpha): the torch
    module caches a longer table and slices [offset:offset+max_seq_len]; here
    we compute exactly those positions (identical values).
    """
    assert dim % 2 == 0 and dim > 2, "rotary dim must be even and > 2"

    half = dim // 2
    itemsize = jnp.dtype(out_dtype).itemsize
    sub = 8 * max(1, 4 // itemsize)        # packed sublane multiple: 8 f32 / 16 bf16 / 32 int8

    # --- parameter glue (mirrors the PyTorch module), host-side numpy ---------
    eff_base = base * (ntk_alpha ** (dim / (dim - 2)))
    inv_half = 1.0 / (eff_base ** (np.arange(0, dim, 2, dtype=np.float64) / dim))  # (half,)

    # --- fold positions into lanes over the HALF width ------------------------
    f0 = 128 // math.gcd(half, 128)        # smallest fold with fold*half % 128 == 0
    w0 = f0 * half
    fold = f0 * max(1, _cdiv(512, w0))     # keep slabs >= ~512 lanes wide
    W = fold * half

    inv_lanes = np.tile(inv_half, fold)                              # (W,)
    group = np.repeat(np.arange(fold, dtype=np.float64), half)       # (W,)
    tables = jnp.asarray(np.stack([inv_lanes, group * inv_lanes]),
                         dtype=jnp.float32)                          # (2, W)

    # --- tiling: large tiles, >= 2 (ideally >= 4) pipeline steps, VMEM-capped -
    rows_total = _cdiv(max_seq_len, fold)
    rows_a = _round_up(rows_total, sub)                 # sublane-packed alignment only
    cap_bytes = 2 << 20                                 # per output buffer; 2 outs x 2
    cap_rows = max(sub, ((cap_bytes // (W * itemsize)) // sub) * sub)  # pipeline bufs fit all gens

    if rows_a >= 4 * sub:
        target_steps = 4                                # v7x: 2 TCs x >=2 steps each
    elif rows_a >= 2 * sub:
        target_steps = 2                                # always overlap final writeback
    else:
        target_steps = 1
    tile_rows = _round_up(_cdiv(rows_a, target_steps), sub)
    tile_rows = max(sub, min(tile_rows, cap_rows, rows_a))
    grid_n = _cdiv(rows_a, tile_rows)
    if grid_n > 1 and grid_n % 2 == 1:                  # even step count for megacore balance
        for cand_steps in (grid_n + 1, grid_n - 1):
            if cand_steps < 2:
                continue
            alt = _round_up(_cdiv(rows_a, cand_steps), sub)
            if sub <= alt <= min(cap_rows, rows_a) and _cdiv(rows_a, alt) % 2 == 0:
                tile_rows = alt
                grid_n = _cdiv(rows_a, alt)
                break

    offset_arr = jnp.array([offset], dtype=jnp.int32)
    out_shape = (
        jax.ShapeDtypeStruct((rows_a, W), out_dtype),   # cos half-slabs
        jax.ShapeDtypeStruct((rows_a, W), out_dtype),   # sin half-slabs
    )

    cos_h2d, sin_h2d = pl.pallas_call(
        functools.partial(_rope_half_kernel, fold),
        out_shape=out_shape,
        grid_spec=pltpu.PrefetchScalarGridSpec(
            num_scalar_prefetch=1,
            grid=(grid_n,),
            in_specs=[
                pl.BlockSpec((2, W), lambda i, off: (0, 0)),     # packed inv/phase table
            ],
            out_specs=[
                pl.BlockSpec((tile_rows, W), lambda i, off: (i, 0)),
                pl.BlockSpec((tile_rows, W), lambda i, off: (i, 0)),
            ],
        ),
        compiler_params=pltpu.CompilerParams(
            dimension_semantics=("parallel",),
        ),
    )(offset_arr, tables)

    # Row-major reshape recovers (positions, dim/2); slice requested range;
    # duplicate the half outside the kernel (one cheap XLA concat), matching
    # torch.cat((freqs, freqs), dim=-1).
    cos_h = cos_h2d.reshape(rows_a * fold, half)[:max_seq_len]
    sin_h = sin_h2d.reshape(rows_a * fold, half)[:max_seq_len]
    cos = jnp.concatenate([cos_h, cos_h], axis=-1).reshape(1, max_seq_len, 1, dim)
    sin = jnp.concatenate([sin_h, sin_h], axis=-1).reshape(1, max_seq_len, 1, dim)
    return [cos, sin]


def _reference(max_seq_len, dim, base=10000, offset=0, ntk_alpha=1.0):
    """Numpy reference mirroring the PyTorch module (including cache slice)."""
    seqlen = max_seq_len + offset
    eff_base = base * (ntk_alpha ** (dim / (dim - 2)))
    inv_freq = 1.0 / (eff_base ** (np.arange(0, dim, 2, dtype=np.float64) / dim))
    cached_len = max(2 * seqlen, 16)
    seq = np.arange(cached_len, dtype=np.float64)
    freqs = np.outer(seq, inv_freq)
    emb = np.concatenate([freqs, freqs], axis=-1).reshape(1, cached_len, 1, dim)
    cos, sin = np.cos(emb), np.sin(emb)
    return [cos[:, offset:offset + max_seq_len].astype(np.float32),
            sin[:, offset:offset + max_seq_len].astype(np.float32)]


if __name__ == "__main__":
    # Module takes no tensor inputs (only max_seq_len / offset / ntk_alpha
    # scalars); key kept for the deterministic-input convention.
    key = jax.random.PRNGKey(0)  # unused: module has no tensor inputs
    del key

    # --- test 1: original small harness (f32, tight tolerance) ---------------
    dim, max_seq_len, offset, ntk_alpha, base = 32, 8, 2, 1.0, 10000
    cos, sin = rotary_embedding_forward(
        max_seq_len, dim, base=base, offset=offset, ntk_alpha=ntk_alpha
    )
    cos = jax.block_until_ready(cos)
    sin = jax.block_until_ready(sin)
    cos_ref, sin_ref = _reference(
        max_seq_len, dim, base=base, offset=offset, ntk_alpha=ntk_alpha
    )
    assert cos.shape == (1, max_seq_len, 1, dim), cos.shape
    assert sin.shape == (1, max_seq_len, 1, dim), sin.shape
    np.testing.assert_allclose(np.asarray(cos), cos_ref, rtol=1e-5, atol=1e-5)
    np.testing.assert_allclose(np.asarray(sin), sin_ref, rtol=1e-5, atol=1e-5)

    # --- test 2: multi-tile grid, ragged final block, ntk scaling (f32) ------
    dim2, seq2, off2, alpha2 = 64, 300, 5, 2.0
    cos2, sin2 = rotary_embedding_forward(seq2, dim2, offset=off2, ntk_alpha=alpha2)
    cos2 = jax.block_until_ready(cos2)
    sin2 = jax.block_until_ready(sin2)
    cr2, sr2 = _reference(seq2, dim2, offset=off2, ntk_alpha=alpha2)
    np.testing.assert_allclose(np.asarray(cos2), cr2, rtol=0, atol=5e-3)
    np.testing.assert_allclose(np.asarray(sin2), sr2, rtol=0, atol=5e-3)

    # --- test 3: bf16 output path (16-row packed-sublane alignment) ----------
    cos3, sin3 = rotary_embedding_forward(40, 32, out_dtype=jnp.bfloat16)
    cos3 = jax.block_until_ready(cos3)
    sin3 = jax.block_until_ready(sin3)
    cr3, sr3 = _reference(40, 32)
    np.testing.assert_allclose(np.asarray(cos3).astype(np.float32), cr3,
                               rtol=0, atol=2e-2)
    np.testing.assert_allclose(np.asarray(sin3).astype(np.float32), sr3,
                               rtol=0, atol=2e-2)

    print("KERNEL_OK")
</pallas_src>

<mosaic_0001>
module attributes {stable_mosaic.version = 11 : i64} {
  func.func @_rope_half_kernel(%arg0: i32, %arg1: memref<1xi32, #tpu.memory_space<smem>>, %arg2: memref<2x512xf32, #tpu.memory_space<vmem>>, %arg3: memref<8x512xf32, #tpu.memory_space<vmem>>, %arg4: memref<8x512xf32, #tpu.memory_space<vmem>>) attributes {dimension_semantics = [#tpu.dimension_semantics<parallel>], iteration_bounds = array<i64: 1>, scalar_prefetch = 1 : i64, scratch_operands = 0 : i64, tpu.core_type = #tpu.core_type<tc>, window_params = [{pipeline_mode = #tpu.pipeline_mode<synchronous>, transform_indices = @transform_0, window_bounds = array<i64: 2, 512>}, {transform_indices = @transform_1, window_bounds = array<i64: 8, 512>}, {transform_indices = @transform_2, window_bounds = array<i64: 8, 512>}]} {
    %c0 = arith.constant 0 : index
    %0 = memref.load %arg1[%c0] : memref<1xi32, #tpu.memory_space<smem>>
    %c8_i32 = arith.constant 8 : i32
    %1 = arith.muli %arg0, %c8_i32 : i32
    %c32_i32 = arith.constant 32 : i32
    %2 = arith.muli %1, %c32_i32 : i32
    %3 = arith.addi %0, %2 : i32
    %4 = arith.sitofp %3 : i32 to f32
    %5 = tpu.iota {dimensions = array<i32: 0>} : vector<8x1xi32>
    %6 = arith.sitofp %5 : vector<8x1xi32> to vector<8x1xf32>
    %cst = arith.constant 3.200000e+01 : f32
    %7 = vector.broadcast %cst : f32 to vector<8x1xf32>
    %8 = arith.mulf %6, %7 : vector<8x1xf32>
    %9 = vector.broadcast %4 : f32 to vector<8x1xf32>
    %10 = arith.addf %9, %8 : vector<8x1xf32>
    %c0_0 = arith.constant 0 : index
    %c0_1 = arith.constant 0 : index
    %11 = vector.load %arg2[%c0_0, %c0_1] : memref<2x512xf32, #tpu.memory_space<vmem>>, vector<2x512xf32>
    %12 = vector.extract_strided_slice %11 {offsets = [0, 0], sizes = [1, 512], strides = [1, 1]} : vector<2x512xf32> to vector<1x512xf32>
    %13 = vector.extract_strided_slice %11 {offsets = [1, 0], sizes = [1, 512], strides = [1, 1]} : vector<2x512xf32> to vector<1x512xf32>
    %14 = vector.broadcast %10 : vector<8x1xf32> to vector<8x512xf32>
    %15 = vector.broadcast %12 : vector<1x512xf32> to vector<8x512xf32>
    %16 = arith.mulf %14, %15 : vector<8x512xf32>
    %17 = vector.broadcast %13 : vector<1x512xf32> to vector<8x512xf32>
    %18 = arith.addf %16, %17 : vector<8x512xf32>
    %19 = math.cos %18 : vector<8x512xf32>
    %c0_2 = arith.constant 0 : index
    %c0_3 = arith.constant 0 : index
    %20 = vector.load %arg3[%c0_2, %c0_3] : memref<8x512xf32, #tpu.memory_space<vmem>>, vector<8x512xf32>
    tpu.vector_store %arg3[%c0_2, %c0_3], %19 {strides = array<i32>} : memref<8x512xf32, #tpu.memory_space<vmem>>, vector<8x512xf32>,
    %21 = math.sin %18 : vector<8x512xf32>
    %c0_4 = arith.constant 0 : index
    %c0_5 = arith.constant 0 : index
    %22 = vector.load %arg4[%c0_4, %c0_5] : memref<8x512xf32, #tpu.memory_space<vmem>>, vector<8x512xf32>
    tpu.vector_store %arg4[%c0_4, %c0_5], %21 {strides = array<i32>} : memref<8x512xf32, #tpu.memory_space<vmem>>, vector<8x512xf32>,
    return
  }
  func.func @transform_0(%arg0: i32, %arg1: memref<1xi32, #tpu.memory_space<smem>>) -> (i32, i32) {
    %c0_i32 = arith.constant 0 : i32
    %c0_i32_0 = arith.constant 0 : i32
    %c0_i32_1 = arith.constant 0 : i32
    return %c0_i32, %c0_i32_0 : i32, i32
  }
  func.func @transform_1(%arg0: i32, %arg1: memref<1xi32, #tpu.memory_space<smem>>) -> (i32, i32) {
    %c0_i32 = arith.constant 0 : i32
    %c0_i32_0 = arith.constant 0 : i32
    return %arg0, %c0_i32 : i32, i32
  }
  func.func @transform_2(%arg0: i32, %arg1: memref<1xi32, #tpu.memory_space<smem>>) -> (i32, i32) {
    %c0_i32 = arith.constant 0 : i32
    %c0_i32_0 = arith.constant 0 : i32
    return %arg0, %c0_i32 : i32, i32
  }
}

</mosaic_0001>

<bundles_post_ra>
// kernel: tpu_custom_call.1
= control target key start
LH: loop header
LB: loop body
LE: loop exit
PB: predicated region body
PF: predicated region fallthrough
CT: control target
= control target key end

     0   :  { %10 = vsyncpa [#allocation5], 0  ;;  %s1978_s0 = inlined_call_operand.<no memory space> [shape: s32[1], index: 0, kind: input, shape index: {}]   ;;  %s1979_s1 = inlined_call_operand.hbm [shape: f32[2,512], index: 1, kind: input, shape index: {}]   ;;  %s1980_s2 = inlined_call_operand.hbm [shape: f32[8,512], index: 2, kind: output, shape index: {0}]   ;;  %s1981_s3 = inlined_call_operand.hbm [shape: f32[8,512], index: 3, kind: output, shape index: {1}]  }
   0x1   :  { %11 = vsyncpa [#allocation6], 0 }
   0x2   :  { %12 = vsyncpa [#allocation9], 0  ;;  %s18_s14 = sshll.u32 %s1979_s1, 4  ;;  %s1461_s15 = smov [#allocation4]   ;;  %s19_s14 = int_to_ptr.hbm [resolvable:$true] %s18_s14 }
   0x3   :  { %s20_s16 = sshll.u32 %s1461_s15, 4  ;;  %s21_s16 = int_to_ptr.vmem [resolvable:$true] %s20_s16 }
   0x4   :  { %23 = dma.hbm_to_vmem [thread:$0]  %s19_s14, 128, %s21_s16, [#allocation5]  }
   0x5   :  { %1455 = dma.done.wait [#allocation5], 128  }
   0x6   :  { %1456 = vsyncadd [#allocation5], 4294967168  ;;  %v32_v0 = vlaneseq  ;;  %s31_s19 = scvt.s32.f32 %s1978_s0  ;;  %v1497_v5 = vld [vmem:[#allocation4] sm:$0xff]  ;;  %v1462_v50 = vmov 683565275   ;;  %s1469_s0 = smov [#allocation7]  }
   0x7   :  { %v40_v7 = vperm.slane %v1497_v5, 0  ;;  %v56_v8 = vperm.slane %v1497_v5, 1  ;;  %v41_v9 = vperm.slane %v1497_v5, 2  ;;  %v57_v10 = vperm.slane %v1497_v5, 3  ;;  %s1321_s1 = sshll.u32 %s1469_s0, 4  ;;  %s1323_s22 = sshll.u32 %s1980_s2, 4  ;;  %s1322_s1 = int_to_ptr.vmem [resolvable:$true] %s1321_s1  ;;  %s1324_s22 = int_to_ptr.hbm [resolvable:$true] %s1323_s22 }
   0x8   :  { %v33_v1 = vshrl.u32 %v32_v0, 7  ;;  %v36_v3 = vstv %s31_s19  ;;  %v42_v11 = vperm.slane %v1497_v5, 4  ;;  %v58_v12 = vperm.slane %v1497_v5, 5  ;;  %s1470_s23 = smov [#allocation8]   ;;  %s1334_s27 = sshll.u32 %s1981_s3, 4  ;;  %s1335_s27 = int_to_ptr.hbm [resolvable:$true] %s1334_s27 }
   0x9   :  { %v48_v13 = vperm.slane %v40_v7, 0  ;;  %v64_v14 = vperm.slane %v56_v8, 1  ;;  %v49_v15 = vperm.slane %v41_v9, 0  ;;  %v65_v16 = vperm.slane %v57_v10, 1  ;;  %s1332_s24 = sshll.u32 %s1470_s23, 4  ;;  %s1333_s24 = int_to_ptr.vmem [resolvable:$true] %s1332_s24 }
   0xa   :  { %v34_v2 = vcvt.s32.f32 %v33_v1  ;;  %v50_v17 = vperm.slane %v42_v11, 0  ;;  %v66_v18 = vperm.slane %v58_v12, 1  ;;  %v1463_v52 = vmov 2475754826  }
   0xb   :  { %v1464_v54 = vmov 2131351028   ;;  %v1465_v56 = vmov 2102212464   ;;  %v1466_v58 = vmov 920167782  }
   0xc   :  { %v35_v4 = vmul.f32 32.0, %v34_v2 }
   0xe   :  { %v1499_v6 = vadd.f32 %v36_v3, %v35_v4  ;;  %v1467_v3 = vmov 1326507024  }
  0x10   :  { %v52_v19 = vmul.f32 %v48_v13, %v1499_v6  ;;  %v53_v20 = vmul.f32 %v49_v15, %v1499_v6  ;;  %v54_v21 = vmul.f32 %v50_v17, %v1499_v6 }
  0x12   :  { %v1510_v22 = vadd.f32 %v64_v14, %v52_v19  ;;  %v1512_v23 = vadd.f32 %v65_v16, %v53_v20  ;;  %v1514_v24 = vadd.f32 %v66_v18, %v54_v21 }
  0x14   :  { %v72_v25 = vand.u32 2147483647, %v1510_v22  ;;  %v75_v26 = vand.u32 2139095040, %v1510_v22  ;;  %v226_v27 = vand.u32 2147483647, %v1512_v23  ;;  %v229_v28 = vand.u32 2139095040, %v1512_v23 }
  0x15   :  { %v383_v29 = vand.u32 2139095040, %v1514_v24 }
  0x16   :  { %v76_v30 = vshrl.u32 %v75_v26, 23  ;;  %v79_v31 = vand.u32 8388607, %v72_v25  ;;  %v230_v32 = vshrl.u32 %v229_v28, 23  ;;  %v233_v33 = vand.u32 8388607, %v226_v27 }
  0x17   :  { %v384_v37 = vshrl.u32 %v383_v29, 23 }
  0x18   :  { %v1349_v34 = vadd.s32 4294967169, %v76_v30  ;;  %v80_v35 = vor.u32 8388608, %v79_v31  ;;  %v1352_v36 = vadd.s32 4294967169, %v230_v32  ;;  %v234_v39 = vor.u32 8388608, %v233_v33 }
  0x19   :  { %v1355_v43 = vadd.s32 4294967169, %v384_v37 }
  0x1a   :  { %v82_v38 = vadd.s32 1, %v1349_v34  ;;  %v236_v40 = vadd.s32 1, %v1352_v36  ;;  %v1525_v42 = vshll.u32 %v80_v35, 8  ;;  %v1531_v48 = vshll.u32 %v234_v39, 8 }
  0x1b   :  { %v1539_v61 = vadd.s32 1, %v1355_v43 }
  0x1c   :  { %vm83_vm0 = vcmp.gt.s32.totalorder %v82_v38, 0  ;;  %vm237_vm1 = vcmp.gt.s32.totalorder %v236_v40, 0  ;;  %v121_v60 = vand.u32 65535, %v1525_v42  ;;  %v122_v1 = vshrl.u32 %v1525_v42, 16 }
  0x1d   :  { %v84_v41 = vsel %vm83_vm0, %v82_v38, 0  ;;  %v238_v45 = vsel %vm237_vm1, %v236_v40, 0  ;;  %vm391_vm15 = vcmp.gt.s32.totalorder %v1539_v61, 0 }
  0x1e   :  { %v86_v44 = vand.u32 31, %v84_v41  ;;  %v1527_v46 = vshrl.u32 %v84_v41, 5  ;;  %v1529_v47 = vand.u32 31, %v238_v45  ;;  %v1559_v16 = vshrl.u32 %v238_v45, 5 }
  0x20   :  { %v87_v49 = vsub.s32 32, %v86_v44  ;;  %v89_v51 = vshll.u32 %v1462_v50, %v86_v44  ;;  %v92_v53 = vshll.u32 %v1463_v52, %v86_v44  ;;  %v95_v55 = vshll.u32 %v1464_v54, %v86_v44 }
  0x21   :  { %v98_v57 = vshll.u32 %v1465_v56, %v86_v44  ;;  %v101_v59 = vshll.u32 %v1466_v58, %v86_v44  ;;  %vm104_vm2 = vcmp.lt.s32.totalorder %v1527_v46, 1  ;;  %vm107_vm3 = vcmp.lt.s32.totalorder %v1527_v46, 4 }
  0x22   :  { %v90_v62 = vshrl.u32 %v1463_v52, %v87_v49  ;;  %v93_v63 = vshrl.u32 %v1464_v54, %v87_v49  ;;  %v96_v0 = vshrl.u32 %v1465_v56, %v87_v49  ;;  %v99_v2 = vshrl.u32 %v1466_v58, %v87_v49 }
  0x23   :  { %v102_v4 = vshrl.u32 %v1467_v3, %v87_v49  ;;  %v1550_v10 = vsub.s32 32, %v1529_v47  ;;  %v88_v11 = vshrl.u32 %v1462_v50, %v87_v49  ;;  %vm106_vm4 = vcmp.lt.s32.totalorder %v1527_v46, 3 }
  0x24   :  { %v91_v7 = vor.u32 %v90_v62, %v89_v51  ;;  %v94_v8 = vor.u32 %v93_v63, %v92_v53  ;;  %v97_v9 = vor.u32 %v96_v0, %v95_v55  ;;  %v100_v12 = vor.u32 %v99_v2, %v98_v57 }
  0x25   :  { %v103_v13 = vor.u32 %v102_v4, %v101_v59  ;;  %vm105_vm5 = vcmp.lt.s32.totalorder %v1527_v46, 2  ;;  %v243_v19 = vshll.u32 %v1462_v50, %v1529_v47  ;;  %v246_v20 = vshll.u32 %v1463_v52, %v1529_v47 }
  0x26   :  { %v112_v14 = vsel %vm104_vm2, %v91_v7, %v94_v8  ;;  %v116_v15 = vsel %vm104_vm2, %v94_v8, %v97_v9  ;;  %v113_v17 = vsel %vm107_vm3, %v100_v12, 920167782  ;;  %v109_v21 = vsel %vm107_vm3, %v97_v9, 2102212464 }
  0x27   :  { %v117_v18 = vsel %vm107_vm3, %v103_v13, 1326507024  ;;  %v114_v26 = vsel %vm106_vm4, %v97_v9, %v113_v17  ;;  %v244_v29 = vshrl.u32 %v1463_v52, %v1550_v10  ;;  %v108_v30 = vsel %vm104_vm2, %v88_v11, %v91_v7 }
  0x28   :  { %v118_v28 = vsel %vm106_vm4, %v100_v12, %v117_v18  ;;  %v115_v31 = vsel %vm105_vm5, %v112_v14, %v114_v26  ;;  %v247_v33 = vshrl.u32 %v1464_v54, %v1550_v10  ;;  %v110_v38 = vsel %vm106_vm4, %v94_v8, %v109_v21 }
  0x29   :  { %v119_v32 = vsel %vm105_vm5, %v116_v15, %v118_v28  ;;  %v145_v36 = vand.u32 65535, %v115_v31  ;;  %v146_v37 = vshrl.u32 %v115_v31, 16  ;;  %v1587_v39 = vor.u32 %v244_v29, %v243_v19 }
  0x2a   :  { %v123_v34 = vand.u32 65535, %v119_v32  ;;  %v124_v35 = vshrl.u32 %v119_v32, 16  ;;  %v1589_v40 = vor.u32 %v247_v33, %v246_v20  ;;  %v249_v41 = vshll.u32 %v1464_v54, %v1529_v47 }
  0x2b   :  { %v250_v49 = vshrl.u32 %v1465_v56, %v1550_v10  ;;  %v147_v53 = vmul.u32 %v145_v36, %v121_v60  ;;  %v148_v55 = vmul.u32 %v146_v37, %v121_v60  ;;  %v149_v57 = vmul.u32 %v145_v36, %v122_v1 }
  0x2c   :  { %v125_v43 = vmul.u32 %v123_v34, %v121_v60  ;;  %v126_v44 = vmul.u32 %v124_v35, %v121_v60  ;;  %v127_v45 = vmul.u32 %v123_v34, %v122_v1  ;;  %v128_v51 = vmul.u32 %v124_v35, %v122_v1 }
  0x2d   :  { %v150_v0 = vmul.u32 %v146_v37, %v122_v1  ;;  %v151_v4 = vshll.u32 %v148_v55, 16  ;;  %v152_v7 = vshrl.u32 %v148_v55, 16  ;;  %v153_v8 = vshll.u32 %v149_v57, 16 }
  0x2e   :  { %v129_v59 = vshll.u32 %v126_v44, 16  ;;  %v130_v62 = vshrl.u32 %v126_v44, 16  ;;  %v131_v63 = vshll.u32 %v127_v45, 16  ;;  %v132_v2 = vshrl.u32 %v127_v45, 16 }
  0x2f   :  { %v154_v11 = vshrl.u32 %v149_v57, 16  ;;  %v252_v12 = vshll.u32 %v1465_v56, %v1529_v47  ;;  %v1468_v13 = vmov 0   ;;  %vm155_vm7 = vc.u32 %v147_v53, %v151_v4 }
  0x30   :  { %vm133_vm6 = vc.u32 %v125_v43, %v129_v59  ;;  %v135_v9 = vadd.s32 %v129_v59, %v125_v43  ;;  %v157_v60 = vadd.s32 %v151_v4, %v147_v53  ;;  %v253_v15 = vshrl.u32 %v1466_v58, %v1550_v10 }
  0x31   :  { %v134_v14 = vsel %vm133_vm6, 1, %v1468_v13  ;;  %v156_v1 = vsel %vm155_vm7, 1, %v1468_v13  ;;  %v255_v18 = vshll.u32 %v1466_v58, %v1529_v47  ;;  %v251_v21 = vor.u32 %v250_v49, %v249_v41 }
  0x32   :  { %v136_v17 = vadd.s32 %v134_v14, %v128_v51  ;;  %vm137_vm8 = vc.u32 %v135_v9, %v131_v63  ;;  %v158_v20 = vadd.s32 %v156_v1, %v150_v0  ;;  %vm159_vm9 = vc.u32 %v157_v60, %v153_v8 }
  0x33   :  { %v138_v19 = vsel %vm137_vm8, 1, %v1468_v13  ;;  %v160_v28 = vsel %vm159_vm9, 1, %v1468_v13  ;;  %v254_v29 = vor.u32 %v253_v15, %v252_v12  ;;  %v256_v31 = vshrl.u32 %v1467_v3, %v1550_v10 }
  0x34   :  { %v140_v26 = vadd.s32 %v138_v19, %v136_v17  ;;  %v1607_v32 = vadd.s32 %v157_v60, %v153_v8  ;;  %v162_v33 = vadd.s32 %v160_v28, %v158_v20  ;;  %vm258_vm10 = vcmp.lt.s32.totalorder %v1559_v16, 1 }
  0x35   :  { %vm260_vm11 = vcmp.lt.s32.totalorder %v1559_v16, 3  ;;  %v257_v34 = vor.u32 %v256_v31, %v255_v18  ;;  %vm259_vm12 = vcmp.lt.s32.totalorder %v1559_v16, 2  ;;  %vm261_vm13 = vcmp.lt.s32.totalorder %v1559_v16, 4 }
  0x36   :  { %v141_v47 = vadd.s32 %v140_v26, %v130_v62  ;;  %v111_v35 = vsel %vm105_vm5, %v108_v30, %v110_v38  ;;  %v163_v36 = vadd.s32 %v162_v33, %v152_v7  ;;  %v266_v37 = vsel %vm258_vm10, %v1587_v39, %v1589_v40 }
  0x37   :  { %v267_v41 = vsel %vm261_vm13, %v254_v29, 920167782  ;;  %v270_v45 = vsel %vm258_vm10, %v1589_v40, %v251_v21  ;;  %v275_v46 = vand.u32 65535, %v1531_v48  ;;  %v271_v49 = vsel %vm261_vm13, %v257_v34, 1326507024 }
  0x38   :  { %v1621_v43 = vadd.s32 %v141_v47, %v132_v2  ;;  %v268_v44 = vsel %vm260_vm11, %v251_v21, %v267_v41  ;;  %v164_v30 = vadd.s32 %v163_v36, %v154_v11  ;;  %v276_v51 = vshrl.u32 %v1531_v48, 16 }
  0x39   :  { %v269_v38 = vsel %vm259_vm12, %v266_v37, %v268_v44  ;;  %v165_v53 = vmul.u32 %v1525_v42, %v111_v35  ;;  %v272_v55 = vsel %vm260_vm11, %v254_v29, %v271_v49  ;;  %v242_v0 = vshrl.u32 %v1462_v50, %v1550_v10 }
  0x3a   :  { %vm167_vm14 = vc.u32 %v1621_v43, %v1607_v32  ;;  %v299_v57 = vand.u32 65535, %v269_v38  ;;  %v168_v59 = vadd.s32 1, %v164_v30  ;;  %v273_v62 = vsel %vm259_vm12, %v270_v45, %v272_v55 }
  0x3b   :  { %v300_v63 = vshrl.u32 %v269_v38, 16  ;;  %v277_v2 = vand.u32 65535, %v273_v62  ;;  %v278_v4 = vshrl.u32 %v273_v62, 16  ;;  %v263_v7 = vsel %vm261_vm13, %v251_v21, 2102212464 }
  0x3c   :  { %v169_v42 = vsel %vm167_vm14, %v168_v59, %v164_v30  ;;  %v303_v9 = vmul.u32 %v299_v57, %v276_v51  ;;  %v301_v60 = vmul.u32 %v299_v57, %v275_v46  ;;  %v380_v1 = vand.u32 2147483647, %v1514_v24 }
  0x3d   :  { %v302_v8 = vmul.u32 %v300_v63, %v275_v46  ;;  %v170_v11 = vadd.s32 %v169_v42, %v165_v53  ;;  %v279_v12 = vmul.u32 %v277_v2, %v275_v46  ;;  %v280_v14 = vmul.u32 %v278_v4, %v275_v46 }
  0x3e   :  { %v281_v15 = vmul.u32 %v277_v2, %v276_v51  ;;  %v392_v10 = vsel %vm391_vm15, %v1539_v61, 0  ;;  %v262_v19 = vsel %vm258_vm10, %v242_v0, %v1587_v39  ;;  %v282_v20 = vmul.u32 %v278_v4, %v276_v51 }
  0x3f   :  { %v305_v17 = vshll.u32 %v302_v8, 16  ;;  %v171_v18 = vadd.s32 536870912, %v170_v11  ;;  %v283_v26 = vshll.u32 %v280_v14, 16  ;;  %v264_v21 = vsel %vm260_vm11, %v1589_v40, %v263_v7 }
  0x40   :  { %v285_v28 = vshll.u32 %v281_v15, 16  ;;  %v304_v29 = vmul.u32 %v300_v63, %v276_v51  ;;  %v307_v31 = vshll.u32 %v303_v9, 16  ;;  %v394_v39 = vand.u32 31, %v392_v10 }
  0x41   :  { %v1654_v33 = vshrl.u32 %v171_v18, 30  ;;  %vm287_vm0 = vc.u32 %v279_v12, %v283_v26  ;;  %v289_v47 = vadd.s32 %v283_v26, %v279_v12  ;;  %vm309_vm1 = vc.u32 %v301_v60, %v305_v17 }
  0x42   :  { %v288_v61 = vsel %vm287_vm0, 1, %v1468_v13  ;;  %v310_v34 = vsel %vm309_vm1, 1, %v1468_v13  ;;  %v311_v35 = vadd.s32 %v305_v17, %v301_v60  ;;  %v284_v37 = vshrl.u32 %v280_v14, 16 }
  0x43   :  { %v173_v36 = vshll.u32 %v1654_v33, 30  ;;  %v290_v41 = vadd.s32 %v288_v61, %v282_v20  ;;  %vm291_vm2 = vc.u32 %v289_v47, %v285_v28  ;;  %v306_v44 = vshrl.u32 %v302_v8, 16 }
  0x44   :  { %v292_v40 = vsel %vm291_vm2, 1, %v1468_v13  ;;  %v312_v45 = vadd.s32 %v310_v34, %v304_v29  ;;  %vm313_vm3 = vc.u32 %v311_v35, %v307_v31  ;;  %v286_v30 = vshrl.u32 %v281_v15, 16 }
  0x45   :  { %v174_v46 = vsub.s32 %v170_v11, %v173_v36  ;;  %v294_v38 = vadd.s32 %v292_v40, %v290_v41  ;;  %v314_v49 = vsel %vm313_vm3, 1, %v1468_v13  ;;  %v308_v51 = vshrl.u32 %v303_v9, 16 }
  0x46   :  { %v316_v53 = vadd.s32 %v314_v49, %v312_v45  ;;  %v1661_v55 = vsub.s32 32, %v394_v39  ;;  %v1663_v62 = vadd.s32 %v311_v35, %v307_v31  ;;  %v265_v63 = vsel %vm259_vm12, %v262_v19, %v264_v21 }
  0x47   :  { %vm175_vm4 = vcmp.lt.s32.totalorder %v174_v46, 0  ;;  %v176_v57 = vsub.s32 0, %v174_v46  ;;  %v295_v59 = vadd.s32 %v294_v38, %v284_v37  ;;  %v387_v42 = vand.u32 8388607, %v380_v1 }
  0x48   :  { %v317_v0 = vadd.s32 %v316_v53, %v306_v44  ;;  %v397_v9 = vshll.u32 %v1462_v50, %v394_v39  ;;  %v398_v11 = vshrl.u32 %v1463_v52, %v1661_v55  ;;  %v166_v12 = vadd.s32 %v1607_v32, %v1621_v43 }
  0x49   :  { %v177_v2 = vsel %vm175_vm4, %v176_v57, %v174_v46  ;;  %v1667_v4 = vadd.s32 %v295_v59, %v286_v30  ;;  %v319_v16 = vmul.u32 %v1531_v48, %v265_v63  ;;  %v1679_v14 = vshrl.u32 %v392_v10, 5 }
  0x4a   :  { %v178_v7 = vclz %v177_v2  ;;  %v318_v8 = vadd.s32 %v317_v0, %v308_v51  ;;  %v406_v17 = vshll.u32 %v1465_v56, %v394_v39  ;;  %v407_v18 = vshrl.u32 %v1466_v58, %v1661_v55 }
  0x4b   :  { %vm321_vm5 = vc.u32 %v1667_v4, %v1663_v62  ;;  %v400_v19 = vshll.u32 %v1463_v52, %v394_v39  ;;  %v401_v20 = vshrl.u32 %v1464_v54, %v1661_v55  ;;  %v403_v32 = vshll.u32 %v1464_v54, %v394_v39 }
  0x4c   :  { %v1350_v60 = vadd.s32 4294967294, %v178_v7  ;;  %v322_v15 = vadd.s32 1, %v318_v8  ;;  %v404_v48 = vshrl.u32 %v1465_v56, %v1661_v55  ;;  %v196_v43 = vsub.s32 4, %v1654_v33 }
  0x4d   :  { %v399_v26 = vor.u32 %v398_v11, %v397_v9  ;;  %v409_v29 = vshll.u32 %v1466_v58, %v394_v39  ;;  %v410_v31 = vshrl.u32 %v1467_v3, %v1661_v55  ;;  %v408_v35 = vor.u32 %v407_v18, %v406_v17 }
  0x4e   :  { %vm1351_vm6 = vcmp.lt.s32.totalorder %v1350_v60, 0  ;;  %v323_v10 = vsel %vm321_vm5, %v322_v15, %v318_v8  ;;  %v402_v37 = vor.u32 %v401_v20, %v400_v19  ;;  %v405_v41 = vor.u32 %v404_v48, %v403_v32 }
  0x4f   :  { %v181_v21 = vsel %vm1351_vm6, 0, %v1350_v60  ;;  %v324_v28 = vadd.s32 %v323_v10, %v319_v16  ;;  %vm412_vm7 = vcmp.lt.s32.totalorder %v1679_v14, 1  ;;  %vm414_vm8 = vcmp.lt.s32.totalorder %v1679_v14, 3 }
  0x50   :  { %v182_v47 = vsub.s32 32, %v181_v21  ;;  %v183_v61 = vshll.u32 %v174_v46, %v181_v21  ;;  %v186_v34 = vsub.s32 4294967266, %v181_v21  ;;  %vm415_vm9 = vcmp.lt.s32.totalorder %v1679_v14, 4 }
  0x51   :  { %v325_v36 = vadd.s32 536870912, %v324_v28  ;;  %vm74_vm10 = vcmp.lt.s32.totalorder %v1510_v22, 0  ;;  %v388_v45 = vor.u32 8388608, %v387_v42  ;;  %v411_v30 = vor.u32 %v410_v31, %v409_v29 }
  0x52   :  { %v184_v40 = vshrl.u32 %v166_v12, %v182_v47  ;;  %v187_v44 = vadd.s32 127, %v186_v34  ;;  %vm1702_vm11 = vcmp.le.f32.partialorder %v72_v25, 0.7853982  ;;  %v421_v51 = vsel %vm415_vm9, %v408_v35, 920167782 }
  0x53   :  { %v1698_v39 = vshrl.u32 %v325_v36, 30  ;;  %vm413_vm12 = vcmp.lt.s32.totalorder %v1679_v14, 2  ;;  %v420_v57 = vsel %vm412_vm7, %v399_v26, %v402_v37  ;;  %v422_v59 = vsel %vm414_vm8, %v405_v41, %v421_v51 }
  0x54   :  { %v185_v38 = vor.u32 %v184_v40, %v183_v61  ;;  %v188_v49 = vshll.u32 %v187_v44, 23  ;;  %v197_v0 = vsel %vm74_vm10, %v196_v43, %v1654_v33  ;;  %v424_v2 = vsel %vm412_vm7, %v402_v37, %v405_v41 }
  0x55   :  { %v327_v53 = vshll.u32 %v1698_v39, 30  ;;  %v396_v7 = vshrl.u32 %v1462_v50, %v1661_v55  ;;  %v425_v8 = vsel %vm415_vm9, %v411_v30, 1326507024  ;;  %v1725_v9 = vshll.u32 %v388_v45, 8 }
  0x56   :  { %v189_v63 = vor.u32 4788187, %v188_v49  ;;  %v192_v25 = vcvt.s32.f32 %v185_v38  ;;  %v417_v12 = vsel %vm415_vm9, %v405_v41, 2102212464  ;;  %v423_v33 = vsel %vm413_vm12, %v420_v57, %v422_v59 }
  0x57   :  { %v1719_v42 = vsub.s32 %v324_v28, %v327_v53  ;;  %v426_v16 = vsel %vm414_vm8, %v408_v35, %v425_v8  ;;  %v429_v15 = vand.u32 65535, %v1725_v9  ;;  %v430_v18 = vshrl.u32 %v1725_v9, 16 }
  0x58   :  { %v190_v11 = vand.u32 2147483647, %v189_v63  ;;  %v427_v55 = vsel %vm413_vm12, %v424_v2, %v426_v16  ;;  %v416_v48 = vsel %vm412_vm7, %v396_v7, %v399_v26  ;;  %v418_v43 = vsel %vm414_vm8, %v402_v37, %v417_v12 }
  0x59   :  { %vm329_vm13 = vcmp.lt.s32.totalorder %v1719_v42, 0  ;;  %v330_v60 = vsub.s32 0, %v1719_v42  ;;  %v431_v19 = vand.u32 65535, %v427_v55  ;;  %v432_v20 = vshrl.u32 %v427_v55, 16 }
  0x5a   :  { %v193_v17 = vmul.f32 %v192_v25, %v190_v11  ;;  %v454_v10 = vshrl.u32 %v423_v33, 16  ;;  %v1746_v47 = vsel %vm1702_vm11, 0, %v197_v0  ;;  %v320_v61 = vadd.s32 %v1663_v62, %v1667_v4 }
  0x5b   :  { %v331_v32 = vsel %vm329_vm13, %v330_v60, %v1719_v42  ;;  %v433_v29 = vmul.u32 %v431_v19, %v429_v15  ;;  %v434_v31 = vmul.u32 %v432_v20, %v429_v15  ;;  %v1750_v34 = vmul.u32 %v431_v19, %v430_v18 }
  0x5c   :  { %v194_v21 = vxor.u32 2147483648, %v193_v17  ;;  %v332_v28 = vclz %v331_v32  ;;  %v1755_v35 = vand.u32 3, %v1746_v47  ;;  %v1764_v40 = vsel %vm413_vm12, %v416_v48, %v418_v43 }
  0x5d   :  { %v437_v37 = vshll.u32 %v434_v31, 16  ;;  %v436_v62 = vmul.u32 %v432_v20, %v430_v18  ;;  %v453_v4 = vand.u32 65535, %v423_v33  ;;  %v1768_v45 = vmul.u32 %v454_v10, %v429_v15 }
  0x5e   :  { %v195_v26 = vsel %vm74_vm10, %v194_v21, %v193_v17  ;;  %v1353_v36 = vadd.s32 4294967294, %v332_v28  ;;  %v439_v38 = vshll.u32 %v1750_v34, 16  ;;  %v438_v11 = vshrl.u32 %v434_v31, 16 }
  0x5f   :  { %v1760_v41 = vsel %vm1702_vm11, %v1510_v22, %v195_v26  ;;  %vm441_vm15 = vc.u32 %v433_v29, %v437_v37  ;;  %v443_v49 = vadd.s32 %v437_v37, %v433_v29  ;;  %v455_v25 = vmul.u32 %v453_v4, %v429_v15 }
  0x60   :  { %v200_v44 = vmul.f32 %v1760_v41, %v1760_v41  ;;  %vm1354_vm14 = vcmp.lt.s32.totalorder %v1353_v36, 0  ;;  %v442_v46 = vsel %vm441_vm15, 1, %v1468_v13  ;;  %v457_v0 = vmul.u32 %v453_v4, %v430_v18 }
  0x61   :  { %v335_v30 = vsel %vm1354_vm14, 0, %v1353_v36  ;;  %v444_v63 = vadd.s32 %v442_v46, %v436_v62  ;;  %vm221_vm0 = vcmp.eq.s32.totalorder %v1755_v35, 2  ;;  %vm445_vm1 = vc.u32 %v443_v49, %v439_v38 }
  0x62   :  { %v201_v51 = vmul.f32 -0.001358992, %v200_v44  ;;  %v208_v53 = vmul.f32 -0.00019511016, %v200_v44  ;;  %v336_v14 = vsub.s32 32, %v335_v30  ;;  %v337_v57 = vshll.u32 %v1719_v42, %v335_v30 }
  0x63   :  { %v340_v59 = vsub.s32 4294967266, %v335_v30  ;;  %v458_v33 = vmul.u32 %v454_v10, %v430_v18  ;;  %v459_v16 = vshll.u32 %v1768_v45, 16  ;;  %vm228_vm2 = vcmp.lt.s32.totalorder %v1512_v23, 0 }
  0x64   :  { %v202_v2 = vadd.f32 0.041655596, %v201_v51  ;;  %v209_v7 = vadd.f32 0.008332121, %v208_v53  ;;  %v338_v8 = vshrl.u32 %v320_v61, %v336_v14  ;;  %v446_v17 = vsel %vm445_vm1, 1, %v1468_v13 }
  0x65   :  { %v341_v12 = vadd.s32 127, %v340_v59  ;;  %vm1779_vm3 = vcmp.le.f32.partialorder %v226_v27, 0.7853982  ;;  %v440_v20 = vshrl.u32 %v1750_v34, 16  ;;  %v448_v32 = vadd.s32 %v446_v17, %v444_v63 }
  0x66   :  { %v203_v60 = vmul.f32 %v202_v2, %v200_v44  ;;  %v210_v55 = vmul.f32 %v209_v7, %v200_v44  ;;  %v339_v42 = vor.u32 %v338_v8, %v337_v57  ;;  %v461_v18 = vshll.u32 %v457_v0, 16 }
  0x67   :  { %v342_v19 = vshll.u32 %v341_v12, 23  ;;  %vm463_vm4 = vc.u32 %v455_v25, %v459_v16  ;;  %v449_v28 = vadd.s32 %v448_v32, %v438_v11  ;;  %v465_v31 = vadd.s32 %v459_v16, %v455_v25 }
  0x68   :  { %v204_v48 = vadd.f32 -0.4999988, %v203_v60  ;;  %v211_v43 = vadd.f32 -0.16666654, %v210_v55  ;;  %v346_v10 = vcvt.s32.f32 %v339_v42  ;;  %v464_v29 = vsel %vm463_vm4, 1, %v1468_v13 }
  0x69   :  { %v343_v21 = vor.u32 4788187, %v342_v19  ;;  %v466_v27 = vadd.s32 %v464_v29, %v458_v33  ;;  %v43_v36 = vperm.slane %v1497_v5, 6  ;;  %v460_v62 = vshrl.u32 %v1768_v45, 16 }
  0x6a   :  { %v205_v61 = vmul.f32 %v204_v48, %v200_v44  ;;  %v212_v26 = vmul.f32 %v211_v43, %v200_v44  ;;  %v462_v34 = vshrl.u32 %v457_v0, 16  ;;  %vm467_vm5 = vc.u32 %v465_v31, %v461_v18 }
  0x6b   :  { %v344_v37 = vand.u32 2147483647, %v343_v21  ;;  %v468_v38 = vsel %vm467_vm5, 1, %v1468_v13  ;;  %v51_v46 = vperm.slane %v43_v36, 0  ;;  %v1790_v51 = vadd.s32 %v449_v28, %v440_v20 }
  0x6c   :  { %v1787_v4 = vadd.f32 1.0, %v205_v61  ;;  %v213_v30 = vadd.f32 1.0, %v212_v26  ;;  %v1792_v53 = vadd.s32 %v465_v31, %v461_v18  ;;  %v470_v44 = vadd.s32 %v468_v38, %v466_v27 }
  0x6d   :  { %v347_v49 = vmul.f32 %v346_v10, %v344_v37  ;;  %v55_v45 = vmul.f32 %v51_v46, %v1499_v6  ;;  %v59_v59 = vperm.slane %v1497_v5, 7  ;;  %vm215_vm6 = vweird.f32 %v1510_v22 }
  0x6e   :  { %v1795_v14 = vmul.f32 %v213_v30, %v1760_v41  ;;  %v222_v57 = vxor.u32 2147483648, %v1787_v4  ;;  %vm218_vm7 = vcmp.eq.s32.totalorder %v1755_v35, 0  ;;  %v471_v25 = vadd.s32 %v470_v44, %v460_v62 }
  0x6f   :  { %v348_v63 = vxor.u32 2147483648, %v347_v49  ;;  %vm217_vm8 = vcmp.lt.s32.totalorder %v1755_v35, 2  ;;  %v67_v2 = vperm.slane %v59_v59, 1  ;;  %v350_v6 = vsub.s32 4, %v1698_v39 }
  0x70   :  { %v219_v0 = vxor.u32 2147483648, %v1795_v14  ;;  %v223_v41 = vsel %vm221_vm0, %v222_v57, %v1795_v14  ;;  %v472_v7 = vadd.s32 %v471_v25, %v462_v34  ;;  %v473_v8 = vmul.u32 %v1725_v9, %v1764_v40 }
  0x71   :  { %v349_v5 = vsel %vm228_vm2, %v348_v63, %v347_v49  ;;  %vm475_vm9 = vc.u32 %v1790_v51, %v1792_v53  ;;  %v1822_v35 = vadd.f32 %v67_v2, %v55_v45  ;;  %v351_v19 = vsel %vm228_vm2, %v350_v6, %v1698_v39 }
  0x72   :  { %v220_v11 = vsel %vm218_vm7, %v1787_v4, %v219_v0  ;;  %v352_v12 = vsel %vm1779_vm3, %v1512_v23, %v349_v5  ;;  %v476_v60 = vadd.s32 1, %v472_v7  ;;  %v1832_v21 = vsel %vm1779_vm3, 0, %v351_v19 }
  0x73   :  { %v224_v33 = vsel %vm217_vm8, %v220_v11, %v223_v41  ;;  %v354_v16 = vmul.f32 %v352_v12, %v352_v12  ;;  %v537_v9 = vand.u32 2139095040, %v1822_v35  ;;  %v370_v31 = vand.u32 3, %v1832_v21 }
  0x74   :  { %v225_v55 = vsel %vm215_vm6, nan, %v224_v33  ;;  %v477_v17 = vsel %vm475_vm9, %v476_v60, %v472_v7  ;;  %v534_v37 = vand.u32 2147483647, %v1822_v35  ;;  %vm369_vm15 = vweird.f32 %v1512_v23 }
  0x75   :  { %688 = vst [vmem:[#allocation7] sm:$0xff] %v225_v55  ;;  %v355_v40 = vmul.f32 -0.001358992, %v354_v16  ;;  %v362_v42 = vmul.f32 -0.00019511016, %v354_v16  ;;  %v478_v20 = vadd.s32 %v477_v17, %v473_v8  ;;  %v538_v32 = vshrl.u32 %v537_v9, 23 }
  0x76   :  { %vm371_vm11 = vcmp.lt.s32.totalorder %v370_v31, 2  ;;  %vm372_vm12 = vcmp.eq.s32.totalorder %v370_v31, 0  ;;  %vm375_vm13 = vcmp.eq.s32.totalorder %v370_v31, 2  ;;  %v541_v45 = vand.u32 8388607, %v534_v37 }
  0x77   :  { %v356_v18 = vadd.f32 0.041655596, %v355_v40  ;;  %v363_v48 = vadd.f32 0.008332121, %v362_v42  ;;  %v479_v43 = vadd.s32 536870912, %v478_v20  ;;  %v1358_v10 = vadd.s32 4294967169, %v538_v32 }
  0x78   :  { %v474_v9 = vadd.s32 %v1792_v53, %v1790_v51  ;;  %v542_v19 = vor.u32 8388608, %v541_v45  ;;  %vm1903_vm5 = vcmp.le.f32.partialorder %v380_v1, 0.7853982  ;;  %vm382_vm7 = vcmp.lt.s32.totalorder %v1514_v24, 0 }
  0x79   :  { %v357_v28 = vmul.f32 %v356_v18, %v354_v16  ;;  %v364_v29 = vmul.f32 %v363_v48, %v354_v16  ;;  %v1835_v61 = vshrl.u32 %v479_v43, 30  ;;  %v544_v26 = vadd.s32 1, %v1358_v10 }
  0x7b   :  { %v358_v27 = vadd.f32 -0.4999988, %v357_v28  ;;  %v365_v36 = vadd.f32 -0.16666654, %v364_v29  ;;  %v481_v39 = vshll.u32 %v1835_v61, 30  ;;  %vm545_vm10 = vcmp.gt.s32.totalorder %v544_v26, 0 }
  0x7c   :  { %v546_v30 = vsel %vm545_vm10, %v544_v26, 0 }
  0x7d   :  { %v359_v62 = vmul.f32 %v358_v27, %v354_v16  ;;  %v366_v34 = vmul.f32 %v365_v36, %v354_v16  ;;  %v482_v15 = vsub.s32 %v478_v20, %v481_v39  ;;  %v548_v38 = vand.u32 31, %v546_v30 }
  0x7e   :  { %v1857_v60 = vshrl.u32 %v546_v30, 5 }
  0x7f   :  { %v1839_v46 = vadd.f32 1.0, %v359_v62  ;;  %v367_v49 = vadd.f32 1.0, %v366_v34  ;;  %vm483_vm14 = vcmp.lt.s32.totalorder %v482_v15, 0  ;;  %v484_v44 = vsub.s32 0, %v482_v15 }
  0x80   :  { %v549_v59 = vsub.s32 32, %v548_v38  ;;  %v551_v41 = vshll.u32 %v1462_v50, %v548_v38  ;;  %v554_v2 = vshll.u32 %v1463_v52, %v548_v38  ;;  %v557_v8 = vshll.u32 %v1464_v54, %v548_v38 }
  0x81   :  { %v1843_v63 = vmul.f32 %v367_v49, %v352_v12  ;;  %v376_v25 = vxor.u32 2147483648, %v1839_v46  ;;  %v485_v5 = vsel %vm483_vm14, %v484_v44, %v482_v15  ;;  %v560_v55 = vshll.u32 %v1465_v56, %v548_v38 }
  0x82   :  { %v552_v6 = vshrl.u32 %v1463_v52, %v549_v59  ;;  %v555_v7 = vshrl.u32 %v1464_v54, %v549_v59  ;;  %v486_v33 = vclz %v485_v5  ;;  %v558_v16 = vshrl.u32 %v1465_v56, %v549_v59 }
  0x83   :  { %v373_v11 = vxor.u32 2147483648, %v1843_v63  ;;  %v377_v12 = vsel %vm375_vm13, %v376_v25, %v1843_v63  ;;  %v561_v52 = vshrl.u32 %v1466_v58, %v549_v59  ;;  %v563_v42 = vshll.u32 %v1466_v58, %v548_v38 }
  0x84   :  { %v1356_v40 = vadd.s32 4294967294, %v486_v33  ;;  %v553_v20 = vor.u32 %v552_v6, %v551_v41  ;;  %v564_v32 = vshrl.u32 %v1467_v3, %v549_v59  ;;  %v1872_v18 = vor.u32 %v555_v7, %v554_v2 }
  0x85   :  { %v374_v54 = vsel %vm372_vm12, %v1839_v46, %v373_v11  ;;  %v559_v48 = vor.u32 %v558_v16, %v557_v8  ;;  %v562_v10 = vor.u32 %v561_v52, %v560_v55  ;;  %vm566_vm1 = vcmp.lt.s32.totalorder %v1857_v60, 1 }
  0x86   :  { %v378_v17 = vsel %vm371_vm11, %v374_v54, %v377_v12  ;;  %vm1357_vm0 = vcmp.lt.s32.totalorder %v1356_v40, 0  ;;  %v565_v51 = vor.u32 %v564_v32, %v563_v42  ;;  %vm568_vm2 = vcmp.lt.s32.totalorder %v1857_v60, 3 }
  0x87   :  { %v379_v56 = vsel %vm369_vm15, nan, %v378_v17  ;;  %v489_v43 = vsel %vm1357_vm0, 0, %v1356_v40  ;;  %vm569_vm3 = vcmp.lt.s32.totalorder %v1857_v60, 4  ;;  %v1877_v3 = vshll.u32 %v542_v19, 8 }
  0x88   :  { %689 = vst [vmem:[#allocation7 + $0x8] sm:$0xff] %v379_v56  ;;  %v490_v58 = vsub.s32 32, %v489_v43  ;;  %v491_v53 = vshll.u32 %v482_v15, %v489_v43  ;;  %v494_v28 = vsub.s32 4294967266, %v489_v43  ;;  %vm567_vm4 = vcmp.lt.s32.totalorder %v1857_v60, 2 }
  0x89   :  { %v574_v26 = vsel %vm566_vm1, %v553_v20, %v1872_v18  ;;  %v575_v27 = vsel %vm569_vm3, %v562_v10, 920167782  ;;  %v578_v36 = vsel %vm566_vm1, %v1872_v18, %v559_v48  ;;  %v579_v39 = vsel %vm569_vm3, %v565_v51, 1326507024 }
  0x8a   :  { %v492_v29 = vshrl.u32 %v474_v9, %v490_v58  ;;  %v495_v31 = vadd.s32 127, %v494_v28  ;;  %v576_v30 = vsel %vm568_vm2, %v559_v48, %v575_v27  ;;  %v584_v15 = vshrl.u32 %v1877_v3, 16 }
  0x8b   :  { %v550_v38 = vshrl.u32 %v1462_v50, %v549_v59  ;;  %v577_v49 = vsel %vm567_vm4, %v574_v26, %v576_v30  ;;  %v580_v44 = vsel %vm568_vm2, %v562_v10, %v579_v39  ;;  %v583_v45 = vand.u32 65535, %v1877_v3 }
  0x8c   :  { %v493_v62 = vor.u32 %v492_v29, %v491_v53  ;;  %v496_v34 = vshll.u32 %v495_v31, 23  ;;  %v581_v5 = vsel %vm567_vm4, %v578_v36, %v580_v44  ;;  %v607_v6 = vand.u32 65535, %v577_v49 }
  0x8d   :  { %v585_v7 = vand.u32 65535, %v581_v5  ;;  %v586_v8 = vshrl.u32 %v581_v5, 16  ;;  %v608_v12 = vshrl.u32 %v577_v49, 16  ;;  %v504_v16 = vsub.s32 4, %v1835_v61 }
  0x8e   :  { %v497_v41 = vor.u32 4788187, %v496_v34  ;;  %v500_v2 = vcvt.s32.f32 %v493_v62  ;;  %v611_v33 = vmul.u32 %v607_v6, %v584_v15  ;;  %v570_v40 = vsel %vm566_vm1, %v550_v38, %v553_v20 }
  0x8f   :  { %v587_v55 = vmul.u32 %v585_v7, %v583_v45  ;;  %v588_v52 = vmul.u32 %v586_v8, %v583_v45  ;;  %v589_v54 = vmul.u32 %v585_v7, %v584_v15  ;;  %v609_v42 = vmul.u32 %v607_v6, %v583_v45 }
  0x90   :  { %v498_v59 = vand.u32 2147483647, %v497_v41  ;;  %v610_v17 = vmul.u32 %v608_v12, %v583_v45  ;;  %v571_v1 = vsel %vm569_vm3, %v559_v48, 2102212464  ;;  %v590_v19 = vmul.u32 %v586_v8, %v584_v15 }
  0x91   :  { %v591_v32 = vshll.u32 %v588_v52, 16  ;;  %v593_v56 = vshll.u32 %v589_v54, 16  ;;  %v612_v10 = vmul.u32 %v608_v12, %v584_v15  ;;  %v615_v58 = vshll.u32 %v611_v33, 16 }
  0x92   :  { %v501_v9 = vmul.f32 %v500_v2, %v498_v59  ;;  %v613_v51 = vshll.u32 %v610_v17, 16  ;;  %v592_v53 = vshrl.u32 %v588_v52, 16  ;;  %v614_v29 = vshrl.u32 %v610_v17, 16 }
  0x93   :  { %vm595_vm8 = vc.u32 %v587_v55, %v591_v32  ;;  %v597_v28 = vadd.s32 %v591_v32, %v587_v55  ;;  %v572_v30 = vsel %vm568_vm2, %v1872_v18, %v571_v1  ;;  %v594_v15 = vshrl.u32 %v589_v54, 16 }
  0x94   :  { %v502_v43 = vxor.u32 2147483648, %v501_v9  ;;  %v596_v20 = vsel %vm595_vm8, 1, %v1468_v13  ;;  %vm617_vm9 = vc.u32 %v609_v42, %v613_v51  ;;  %v619_v26 = vadd.s32 %v613_v51, %v609_v42 }
  0x95   :  { %v598_v27 = vadd.s32 %v596_v20, %v590_v19  ;;  %vm599_vm10 = vc.u32 %v597_v28, %v593_v56  ;;  %v618_v36 = vsel %vm617_vm9, 1, %v1468_v13  ;;  %v616_v41 = vshrl.u32 %v611_v33, 16 }
  0x96   :  { %v503_v31 = vsel %vm382_vm7, %v502_v43, %v501_v9  ;;  %v600_v62 = vsel %vm599_vm10, 1, %v1468_v13  ;;  %v620_v34 = vadd.s32 %v618_v36, %v612_v10  ;;  %vm621_vm11 = vc.u32 %v619_v26, %v615_v58 }
  0x97   :  { %v506_v48 = vsel %vm1903_vm5, %v1514_v24, %v503_v31  ;;  %v602_v38 = vadd.s32 %v600_v62, %v598_v27  ;;  %v622_v49 = vsel %vm621_vm11, 1, %v1468_v13  ;;  %v623_v6 = vadd.s32 %v619_v26, %v615_v58 }
  0x98   :  { %v508_v39 = vmul.f32 %v506_v48, %v506_v48  ;;  %v624_v2 = vadd.s32 %v622_v49, %v620_v34  ;;  %v573_v12 = vsel %vm567_vm4, %v570_v40, %v572_v30  ;;  %v505_v18 = vsel %vm382_vm7, %v504_v16, %v1835_v61 }
  0x99   :  { %v603_v5 = vadd.s32 %v602_v38, %v592_v53  ;;  %v627_v9 = vmul.u32 %v1877_v3, %v573_v12  ;;  %v507_v33 = vsel %vm1903_vm5, 0, %v505_v18  ;;  %vm523_vm1 = vweird.f32 %v1514_v24 }
  0x9a   :  { %v509_v44 = vmul.f32 -0.001358992, %v508_v39  ;;  %v516_v45 = vmul.f32 -0.00019511016, %v508_v39  ;;  %v625_v59 = vadd.s32 %v624_v2, %v614_v29  ;;  %v524_v60 = vand.u32 3, %v507_v33 }
  0x9b   :  { %v604_v55 = vadd.s32 %v603_v5, %v594_v15  ;;  %v991_v62 = vadd.s32 3, %v1832_v21  ;;  %v1146_v34 = vadd.s32 3, %v507_v33 }
  0x9c   :  { %v510_v7 = vadd.f32 0.041655596, %v509_v44  ;;  %v517_v8 = vadd.f32 0.008332121, %v516_v45  ;;  %v626_v13 = vadd.s32 %v625_v59, %v616_v41  ;;  %vm529_vm13 = vcmp.eq.s32.totalorder %v524_v60, 2 }
  0x9d   :  { %vm629_vm12 = vc.u32 %v604_v55, %v623_v6  ;;  %vm526_vm14 = vcmp.eq.s32.totalorder %v524_v60, 0  ;;  %vm525_vm0 = vcmp.lt.s32.totalorder %v524_v60, 2  ;;  %v628_v30 = vadd.s32 %v623_v6, %v604_v55 }
  0x9e   :  { %v511_v52 = vmul.f32 %v510_v7, %v508_v39  ;;  %v518_v54 = vmul.f32 %v517_v8, %v508_v39  ;;  %v630_v1 = vadd.s32 1, %v626_v13  ;;  %v992_v49 = vand.u32 3, %v991_v62 }
  0x9f   :  { %v1147_v2 = vand.u32 3, %v1146_v34 }
  0xa0   :  { %v512_v42 = vadd.f32 -0.4999988, %v511_v52  ;;  %v519_v17 = vadd.f32 -0.16666654, %v518_v54  ;;  %v631_v32 = vsel %vm629_vm12, %v630_v1, %v626_v13  ;;  %vm993_vm8 = vcmp.lt.s32.totalorder %v992_v49, 2 }
  0xa1   :  { %v632_v56 = vadd.s32 %v631_v32, %v627_v9  ;;  %vm994_vm9 = vcmp.eq.s32.totalorder %v992_v49, 0  ;;  %vm997_vm10 = vcmp.eq.s32.totalorder %v992_v49, 2  ;;  %vm1148_vm11 = vcmp.lt.s32.totalorder %v1147_v2, 2 }
  0xa2   :  { %v513_v40 = vmul.f32 %v512_v42, %v508_v39  ;;  %v520_v19 = vmul.f32 %v519_v17, %v508_v39  ;;  %v836_v39 = vadd.s32 3, %v1746_v47  ;;  %v996_v59 = vsel %vm994_vm9, %v1839_v46, %v373_v11 }
  0xa3   :  { %v633_v16 = vadd.s32 536870912, %v632_v56  ;;  %vm1149_vm12 = vcmp.eq.s32.totalorder %v1147_v2, 0 }
  0xa4   :  { %v1933_v43 = vadd.f32 1.0, %v513_v40  ;;  %v521_v61 = vadd.f32 1.0, %v520_v19  ;;  %v837_v38 = vand.u32 3, %v836_v39 }
  0xa5   :  { %v1936_v51 = vshrl.u32 %v633_v16, 30 }
  0xa6   :  { %v522_v10 = vmul.f32 %v521_v61, %v506_v48  ;;  %v530_v3 = vxor.u32 2147483648, %v1933_v43  ;;  %vm839_vm4 = vcmp.eq.s32.totalorder %v837_v38, 0  ;;  %vm842_vm5 = vcmp.eq.s32.totalorder %v837_v38, 2 }
  0xa7   :  { %v635_v53 = vshll.u32 %v1936_v51, 30  ;;  %vm838_vm7 = vcmp.lt.s32.totalorder %v837_v38, 2  ;;  %v841_v47 = vsel %vm839_vm4, %v1787_v4, %v219_v0  ;;  %v844_v21 = vsel %vm842_vm5, %v222_v57, %v1795_v14 }
  0xa8   :  { %v527_v50 = vxor.u32 2147483648, %v522_v10  ;;  %v531_v58 = vsel %vm529_vm13, %v530_v3, %v522_v10  ;;  %v845_v12 = vsel %vm838_vm7, %v841_v47, %v844_v21  ;;  %v999_v0 = vsel %vm997_vm10, %v376_v25, %v1843_v63 }
  0xa9   :  { %v636_v31 = vsub.s32 %v632_v56, %v635_v53  ;;  %v846_v18 = vsel %vm215_vm6, nan, %v845_v12  ;;  %v1000_v57 = vsel %vm993_vm8, %v996_v59, %v999_v0  ;;  %vm1152_vm13 = vcmp.eq.s32.totalorder %v1147_v2, 2 }
  0xaa   :  { %v528_v28 = vsel %vm526_vm14, %v1933_v43, %v527_v50  ;;  %1312 = vst [vmem:[#allocation8] sm:$0xff] %v846_v18  ;;  %v1151_v55 = vsel %vm1149_vm12, %v1933_v43, %v527_v50  ;;  %v1001_v52 = vsel %vm369_vm15, nan, %v1000_v57  ;;  %v1154_v22 = vsel %vm1152_vm13, %v530_v3, %v522_v10 }
  0xab   :  { %v532_v29 = vsel %vm525_vm0, %v528_v28, %v531_v58  ;;  %vm637_vm2 = vcmp.lt.s32.totalorder %v636_v31, 0  ;;  %v638_v26 = vsub.s32 0, %v636_v31  ;;  %1313 = vst [vmem:[#allocation8 + $0x8] sm:$0xff] %v1001_v52  ;;  %v1155_v54 = vsel %vm1148_vm11, %v1151_v55, %v1154_v22 }
  0xac   :  { %v533_v20 = vsel %vm523_vm1, nan, %v532_v29  ;;  %v1156_v46 = vsel %vm523_vm1, nan, %v1155_v54  ;;  %vm536_vm6 = vcmp.lt.s32.totalorder %v1822_v35, 0  ;;  %v658_v63 = vsub.s32 4, %v1936_v51 }
  0xad   :  { %690 = vst [vmem:[#allocation7 + $0x10] sm:$0xff] %v533_v20  ;;  %v639_v48 = vsel %vm637_vm2, %v638_v26, %v636_v31  ;;  %vm535_vm14 = vcmp.le.f32.partialorder %v534_v37, 0.7853982  ;;  %vm677_vm5 = vweird.f32 %v1822_v35 }
  0xae   :  { %v640_v27 = vclz %v639_v48  ;;  %1314 = vst [vmem:[#allocation8 + $0x10] sm:$0xff] %v1156_v46  ;;  %v659_v9 = vsel %vm536_vm6, %v658_v63, %v1936_v51 }
  0xaf   :  { %v661_v17 = vsel %vm535_vm14, 0, %v659_v9 }
  0xb0   :  { %v1359_v36 = vadd.s32 4294967294, %v640_v27  ;;  %v1301_v19 = vadd.s32 3, %v661_v17  ;;  %v678_v16 = vand.u32 3, %v661_v17 }
  0xb2   :  { %vm1360_vm3 = vcmp.lt.s32.totalorder %v1359_v36, 0  ;;  %v1302_v10 = vand.u32 3, %v1301_v19  ;;  %vm683_vm15 = vcmp.eq.s32.totalorder %v678_v16, 2  ;;  %vm679_vm1 = vcmp.lt.s32.totalorder %v678_v16, 2 }
  0xb3   :  { %v643_v15 = vsel %vm1360_vm3, 0, %v1359_v36  ;;  %vm680_vm2 = vcmp.eq.s32.totalorder %v678_v16, 0 }
  0xb4   :  { %v644_v44 = vsub.s32 32, %v643_v15  ;;  %v645_v45 = vshll.u32 %v636_v31, %v643_v15  ;;  %v648_v41 = vsub.s32 4294967266, %v643_v15  ;;  %vm1307_vm0 = vcmp.eq.s32.totalorder %v1302_v10, 2 }
  0xb5   :  { %vm1304_vm3 = vcmp.eq.s32.totalorder %v1302_v10, 0  ;;  %vm1303_vm4 = vcmp.lt.s32.totalorder %v1302_v10, 2 }
  0xb6   :  { %v646_v5 = vshrl.u32 %v628_v30, %v644_v44  ;;  %v649_v7 = vadd.s32 127, %v648_v41 }
  0xb8   :  { %v647_v6 = vor.u32 %v646_v5, %v645_v45  ;;  %v650_v8 = vshll.u32 %v649_v7, 23 }
  0xba   :  { %v651_v4 = vor.u32 4788187, %v650_v8  ;;  %v654_v14 = vcvt.s32.f32 %v647_v6 }
  0xbc   :  { %v652_v11 = vand.u32 2147483647, %v651_v4 }
  0xbe   :  { %v655_v13 = vmul.f32 %v654_v14, %v652_v11 }
  0xc0   :  { %v656_v25 = vxor.u32 2147483648, %v655_v13 }
  0xc2   :  { %v657_v23 = vsel %vm536_vm6, %v656_v25, %v655_v13 }
  0xc3   :  { %v660_v33 = vsel %vm535_vm14, %v1822_v35, %v657_v23 }
  0xc4   :  { %v662_v42 = vmul.f32 %v660_v33, %v660_v33 }
  0xc6   :  { %v663_v1 = vmul.f32 -0.001358992, %v662_v42  ;;  %v670_v60 = vmul.f32 -0.00019511016, %v662_v42 }
  0xc8   :  { %v664_v24 = vadd.f32 0.041655596, %v663_v1  ;;  %v671_v40 = vadd.f32 0.008332121, %v670_v60 }
  0xca   :  { %v665_v32 = vmul.f32 %v664_v24, %v662_v42  ;;  %v672_v56 = vmul.f32 %v671_v40, %v662_v42 }
  0xcc   :  { %v666_v43 = vadd.f32 -0.4999988, %v665_v32  ;;  %v673_v61 = vadd.f32 -0.16666654, %v672_v56 }
  0xce   :  { %v667_v37 = vmul.f32 %v666_v43, %v662_v42  ;;  %v674_v3 = vmul.f32 %v673_v61, %v662_v42 }
  0xd0   :  { %v668_v50 = vadd.f32 1.0, %v667_v37  ;;  %v675_v58 = vadd.f32 1.0, %v674_v3 }
  0xd2   :  { %v676_v51 = vmul.f32 %v675_v58, %v660_v33  ;;  %v684_v53 = vxor.u32 2147483648, %v668_v50 }
  0xd4   :  { %v681_v28 = vxor.u32 2147483648, %v676_v51  ;;  %v685_v29 = vsel %vm683_vm15, %v684_v53, %v676_v51  ;;  %v1309_v31 = vsel %vm1307_vm0, %v684_v53, %v676_v51 }
  0xd6   :  { %v682_v20 = vsel %vm680_vm2, %v668_v50, %v681_v28  ;;  %v1306_v26 = vsel %vm1304_vm3, %v668_v50, %v681_v28 }
  0xd7   :  { %v686_v48 = vsel %vm679_vm1, %v682_v20, %v685_v29  ;;  %v1310_v27 = vsel %vm1303_vm4, %v1306_v26, %v1309_v31 }
  0xd8   :  { %v687_v36 = vsel %vm677_vm5, nan, %v686_v48  ;;  %v1311_v39 = vsel %vm677_vm5, nan, %v1310_v27 }
  0xd9   :  { %691 = vst [vmem:[#allocation7 + $0x18] sm:$0xff] %v687_v36 }
  0xda   :  { %1315 = vst [vmem:[#allocation8 + $0x18] sm:$0xff] %v1311_v39  ;;  %1326 = dma.vmem_to_hbm [thread:$0]  %s1322_s1, 512, %s1324_s22, [#allocation6]  }
  0xdb   :  { %1337 = dma.vmem_to_hbm [thread:$0]  %s1333_s24, 512, %s1335_s27, [#allocation9]  }
  0xdc   :  { %1457 = dma.done.wait [#allocation6], 512  }
  0xdd   :  { %1458 = vsyncadd [#allocation6], 4294966784 }
  0xde   :  { %1459 = dma.done.wait [#allocation9], 512  }
  0xdf   :  { %1460 = vsyncadd [#allocation9], 4294966784 }
  0xe0   :  { %1346 = vsyncpa [#allocation5], 1 }
  0xe1   :  { %1347 = vsyncpa [#allocation6], 1 }
  0xe2   :  { %1348 = vsyncpa [#allocation9], 1 }

</bundles_post_ra>
